<compile_context>
chip_gen: v7x
topology: tpu7x:2x2x1
jax: 0.10.0
libtpu: 0.0.40
codegen_flags: <defaults>
</compile_context>

<pallas_src>
import jax
import jax.numpy as jnp
from jax.experimental import pallas as pl
from jax.experimental.pallas import tpu as pltpu


def _round_up(n: int, m: int) -> int:
    return ((n + m - 1) // m) * m


def _mlp(x_ref, w1_ref, b1_ref, w2_ref, b2_ref):
    """tanh(x @ W1 + b1) @ W2 + b2 on the current VMEM tiles (f32)."""
    x = x_ref[...]                           # (TB, IN)
    w1 = w1_ref[...]                         # (IN, H)
    # Layer 1 on the VPU: IN is tiny (4 for CartPole), so a handful of
    # broadcast-FMAs beat a nearly-empty MXU pass.  Static loop -> unrolled.
    h = b1_ref[...] + x[:, 0:1] * w1[0:1, :]
    for k in range(1, x_ref.shape[1]):
        h = h + x[:, k:k + 1] * w1[k:k + 1, :]
    h = jnp.tanh(h)                          # EUP
    # Layer 2 on the MXU.  Output keeps its true (TB, A) shape (no lane pad):
    # the in-VMEM store count is the same, and HBM writeback is 64x smaller.
    q = jnp.dot(h, w2_ref[...], preferred_element_type=jnp.float32)
    return q + b2_ref[...]


def mlp_kernel(x_ref, w1_ref, b1_ref, w2_ref, b2_ref, q_ref):
    q_ref[...] = _mlp(x_ref, w1_ref, b1_ref, w2_ref, b2_ref).astype(q_ref.dtype)


def mlp_act_kernel(x_ref, w1_ref, b1_ref, w2_ref, b2_ref, q_ref, a_ref):
    q = _mlp(x_ref, w1_ref, b1_ref, w2_ref, b2_ref)
    q_ref[...] = q.astype(q_ref.dtype)
    # Fused argmax (first maximal index, matching torch.argmax) -> no extra
    # XLA launch / HBM round trip for the act() path.
    q_max = jnp.max(q, axis=-1, keepdims=True)
    col = jax.lax.broadcasted_iota(jnp.int32, q.shape, 1)
    first = jnp.min(jnp.where(q == q_max, col, q.shape[-1]),
                    axis=-1, keepdims=True)
    a_ref[...] = first.astype(jnp.int32)


_VMEM = pl.BlockSpec(memory_space=pltpu.MemorySpace.VMEM)


def network_forward(x, w1, b1, w2, b2, *, block_b=2048, small_batch=128):
    """q_values = tanh(x @ w1 + b1) @ w2 + b2, shape (B, A)."""
    B, IN = x.shape
    H = w1.shape[-1]
    A = w2.shape[-1]
    b1 = b1.reshape(1, H)   # metadata-only / constant-folds under jit
    b2 = b2.reshape(1, A)

    if B <= small_batch:
        # Small batch (single-env / tiny minibatch): gridless, every operand
        # placed directly in VMEM.  No pipeline prologue/epilogue, no padding.
        return pl.pallas_call(
            mlp_kernel,
            out_shape=jax.ShapeDtypeStruct((B, A), jnp.float32),
            in_specs=[_VMEM] * 5,
            out_specs=_VMEM,
        )(x, w1, b1, w2, b2)

    # Batched path (vectorized envs / replay minibatch): large batch tiles so
    # per-grid-step overhead is amortized, but always >= 2 tiles so that on
    # v7x the "parallel" batch axis is sharded across both TensorCores.
    # Weights/biases are pinned to block (0, 0) -> stay resident in VMEM.
    tile = min(block_b, max(8, _round_up(pl.cdiv(B, 2), 8)))
    nb = pl.cdiv(B, tile)   # ragged last tile: OOB reads padded, OOB writes dropped
    return pl.pallas_call(
        mlp_kernel,
        out_shape=jax.ShapeDtypeStruct((B, A), jnp.float32),
        grid=(nb,),
        in_specs=[
            pl.BlockSpec((tile, IN), lambda i: (i, 0)),   # x: tiled over batch
            pl.BlockSpec((IN, H), lambda i: (0, 0)),      # w1: resident
            pl.BlockSpec((1, H), lambda i: (0, 0)),       # b1: resident
            pl.BlockSpec((H, A), lambda i: (0, 0)),       # w2: resident
            pl.BlockSpec((1, A), lambda i: (0, 0)),       # b2: resident
        ],
        out_specs=pl.BlockSpec((tile, A), lambda i: (i, 0)),
        compiler_params=pltpu.CompilerParams(
            dimension_semantics=("parallel",)),
    )(x, w1, b1, w2, b2)


def network_act(obs, w1, b1, w2, b2):
    """Network.act equivalent: fused forward + argmax. Returns (q, actions)."""
    x = obs.reshape(1, -1) if obs.ndim == 1 else obs
    B, _ = x.shape
    H = w1.shape[-1]
    A = w2.shape[-1]
    q, a = pl.pallas_call(
        mlp_act_kernel,
        out_shape=(jax.ShapeDtypeStruct((B, A), jnp.float32),
                   jax.ShapeDtypeStruct((B, 1), jnp.int32)),
        in_specs=[_VMEM] * 5,
        out_specs=(_VMEM, _VMEM),
    )(x, w1, b1.reshape(1, H), w2, b2.reshape(1, A))
    return q, a[:, 0]


def init_params(key, in_features=4, hidden=64, actions=2):
    # Deterministic init mimicking torch.nn.Linear default (U[-1/sqrt(fan_in), +]).
    k1, k2, k3, k4 = jax.random.split(key, 4)
    bound1 = 1.0 / jnp.sqrt(in_features)
    bound2 = 1.0 / jnp.sqrt(hidden)
    w1 = jax.random.uniform(k1, (in_features, hidden), jnp.float32, -bound1, bound1)
    b1 = jax.random.uniform(k2, (1, hidden), jnp.float32, -bound1, bound1)
    w2 = jax.random.uniform(k3, (hidden, actions), jnp.float32, -bound2, bound2)
    b2 = jax.random.uniform(k4, (1, actions), jnp.float32, -bound2, bound2)
    return w1, b1, w2, b2


if __name__ == "__main__":
    # TODO(synk): gym env interaction / replay buffer / epsilon-greedy training
    # loop are host-side control flow and are not kernelized; only
    # Network.forward and the act() q->argmax are.
    key = jax.random.PRNGKey(0)
    kx1, kx2, kx3, kp = jax.random.split(key, 4)

    IN, H, A = 4, 64, 2
    w1, b1, w2, b2 = init_params(kp, IN, H, A)

    fwd = jax.jit(network_forward)
    act = jax.jit(network_act)

    def ref_fwd(x):
        return jnp.tanh(x @ w1 + b1) @ w2 + b2

    # Path 1: small batch -> gridless VMEM kernel.
    x_small = jax.random.normal(kx1, (8, IN), jnp.float32)
    q_small = jax.block_until_ready(fwd(x_small, w1, b1, w2, b2))
    assert q_small.shape == (8, A)
    assert jnp.allclose(q_small, ref_fwd(x_small), rtol=1e-5, atol=1e-5), \
        "small-batch mismatch"

    # Path 2: batched (vectorized envs) -> >=2 batch tiles, "parallel" axis.
    x_big = jax.random.normal(kx2, (256, IN), jnp.float32)
    q_big = jax.block_until_ready(fwd(x_big, w1, b1, w2, b2))
    assert q_big.shape == (256, A)
    assert jnp.allclose(q_big, ref_fwd(x_big), rtol=1e-5, atol=1e-5), \
        "batched mismatch"

    # Path 3: Network.act equivalent -- forward + argmax fused in one kernel.
    obs = jax.random.normal(kx3, (IN,), jnp.float32)
    q_act, action = jax.block_until_ready(act(obs, w1, b1, w2, b2))
    assert q_act.shape == (1, A) and action.shape == (1,)
    assert jnp.allclose(q_act, ref_fwd(obs.reshape(1, IN)), rtol=1e-5, atol=1e-5), \
        "act q mismatch"
    assert int(action[0]) == int(jnp.argmax(ref_fwd(obs.reshape(1, IN))[0])), \
        "act argmax mismatch"

    print("KERNEL_OK")
</pallas_src>

<mosaic_0001>
module attributes {stable_mosaic.version = 11 : i64} {
  func.func @mlp_kernel(%arg0: memref<8x4xf32, #tpu.memory_space<vmem>>, %arg1: memref<4x64xf32, #tpu.memory_space<vmem>>, %arg2: memref<1x64xf32, #tpu.memory_space<vmem>>, %arg3: memref<64x2xf32, #tpu.memory_space<vmem>>, %arg4: memref<1x2xf32, #tpu.memory_space<vmem>>, %arg5: memref<8x2xf32, #tpu.memory_space<vmem>>) attributes {dimension_semantics = [], scalar_prefetch = 0 : i64, scratch_operands = 0 : i64, tpu.core_type = #tpu.core_type<tc>} {
    %c0 = arith.constant 0 : index
    %c0_0 = arith.constant 0 : index
    %0 = vector.load %arg0[%c0, %c0_0] : memref<8x4xf32, #tpu.memory_space<vmem>>, vector<8x4xf32>
    %c0_1 = arith.constant 0 : index
    %c0_2 = arith.constant 0 : index
    %1 = vector.load %arg1[%c0_1, %c0_2] : memref<4x64xf32, #tpu.memory_space<vmem>>, vector<4x64xf32>
    %c0_3 = arith.constant 0 : index
    %c0_4 = arith.constant 0 : index
    %2 = vector.load %arg2[%c0_3, %c0_4] : memref<1x64xf32, #tpu.memory_space<vmem>>, vector<1x64xf32>
    %3 = vector.extract_strided_slice %0 {offsets = [0, 0], sizes = [8, 1], strides = [1, 1]} : vector<8x4xf32> to vector<8x1xf32>
    %4 = vector.extract_strided_slice %1 {offsets = [0, 0], sizes = [1, 64], strides = [1, 1]} : vector<4x64xf32> to vector<1x64xf32>
    %5 = vector.broadcast %3 : vector<8x1xf32> to vector<8x64xf32>
    %6 = vector.broadcast %4 : vector<1x64xf32> to vector<8x64xf32>
    %7 = arith.mulf %5, %6 : vector<8x64xf32>
    %8 = vector.broadcast %2 : vector<1x64xf32> to vector<8x64xf32>
    %9 = arith.addf %8, %7 : vector<8x64xf32>
    %10 = vector.extract_strided_slice %0 {offsets = [0, 1], sizes = [8, 1], strides = [1, 1]} : vector<8x4xf32> to vector<8x1xf32>
    %11 = vector.extract_strided_slice %1 {offsets = [1, 0], sizes = [1, 64], strides = [1, 1]} : vector<4x64xf32> to vector<1x64xf32>
    %12 = vector.broadcast %10 : vector<8x1xf32> to vector<8x64xf32>
    %13 = vector.broadcast %11 : vector<1x64xf32> to vector<8x64xf32>
    %14 = arith.mulf %12, %13 : vector<8x64xf32>
    %15 = arith.addf %9, %14 : vector<8x64xf32>
    %16 = vector.extract_strided_slice %0 {offsets = [0, 2], sizes = [8, 1], strides = [1, 1]} : vector<8x4xf32> to vector<8x1xf32>
    %17 = vector.extract_strided_slice %1 {offsets = [2, 0], sizes = [1, 64], strides = [1, 1]} : vector<4x64xf32> to vector<1x64xf32>
    %18 = vector.broadcast %16 : vector<8x1xf32> to vector<8x64xf32>
    %19 = vector.broadcast %17 : vector<1x64xf32> to vector<8x64xf32>
    %20 = arith.mulf %18, %19 : vector<8x64xf32>
    %21 = arith.addf %15, %20 : vector<8x64xf32>
    %22 = vector.extract_strided_slice %0 {offsets = [0, 3], sizes = [8, 1], strides = [1, 1]} : vector<8x4xf32> to vector<8x1xf32>
    %23 = vector.extract_strided_slice %1 {offsets = [3, 0], sizes = [1, 64], strides = [1, 1]} : vector<4x64xf32> to vector<1x64xf32>
    %24 = vector.broadcast %22 : vector<8x1xf32> to vector<8x64xf32>
    %25 = vector.broadcast %23 : vector<1x64xf32> to vector<8x64xf32>
    %26 = arith.mulf %24, %25 : vector<8x64xf32>
    %27 = arith.addf %21, %26 : vector<8x64xf32>
    %28 = math.tanh %27 : vector<8x64xf32>
    %c0_5 = arith.constant 0 : index
    %c0_6 = arith.constant 0 : index
    %29 = vector.load %arg3[%c0_5, %c0_6] : memref<64x2xf32, #tpu.memory_space<vmem>>, vector<64x2xf32>
    %cst = arith.constant dense<0.000000e+00> : vector<8x2xf32>
    %30 = tpu.matmul %28, %29, %cst {dimension_numbers = #tpu.dot_dimension_numbers<[1], [0], [0], [1], [0, 0, 1, 1], [], []>} : vector<8x64xf32>, vector<64x2xf32>, vector<8x2xf32> -> vector<8x2xf32>
    %c0_7 = arith.constant 0 : index
    %c0_8 = arith.constant 0 : index
    %31 = vector.load %arg4[%c0_7, %c0_8] : memref<1x2xf32, #tpu.memory_space<vmem>>, vector<1x2xf32>
    %32 = vector.broadcast %31 : vector<1x2xf32> to vector<8x2xf32>
    %33 = arith.addf %30, %32 : vector<8x2xf32>
    %c0_9 = arith.constant 0 : index
    %c0_10 = arith.constant 0 : index
    %34 = vector.load %arg5[%c0_9, %c0_10] : memref<8x2xf32, #tpu.memory_space<vmem>>, vector<8x2xf32>
    tpu.vector_store %arg5[%c0_9, %c0_10], %33 {strides = array<i32>} : memref<8x2xf32, #tpu.memory_space<vmem>>, vector<8x2xf32>,
    return
  }
}

</mosaic_0001>

<bundles_post_ra>
// kernel: network_forward.1
= control target key start
LH: loop header
LB: loop body
LE: loop exit
PB: predicated region body
PF: predicated region fallthrough
CT: control target
= control target key end

     0   :  { %v223_v0 = vmov 0   ;;  %v224_v2 = vmov 2   ;;  %v225_v3 = vmov 1   ;;  %v226_v4 = vmov 3   ;;  %s299_s0 = inlined_call_operand.vmem [shape: f32[8,4], index: 0, kind: input, shape index: {}]   ;;  %s300_s3 = inlined_call_operand.vmem [shape: f32[64,2], index: 3, kind: input, shape index: {}]   ;;  %s301_s1 = inlined_call_operand.vmem [shape: f32[4,64], index: 1, kind: input, shape index: {}]   ;;  %s302_s2 = inlined_call_operand.vmem [shape: f32[1,64], index: 2, kind: input, shape index: {}]   ;;  %s303_s4 = inlined_call_operand.vmem [shape: f32[1,2], index: 4, kind: input, shape index: {}]   ;;  %s304_s5 = inlined_call_operand.vmem [shape: f32[8,2], index: 5, kind: output, shape index: {}]  }
   0x1   :  { %216 = vset.pattern.permute.xlu0 %v223_v0  ;;  %v20_v1 = vld [vmem:[%s299_s0] sm:$0xff]  ;;  %218 = vset.pattern.permute.xlu1 %v224_v2  ;;  %v72_v6 = vld [vmem:[%s300_s3 + $0x8] sm:$0xff]  ;;  %v227_v8 = vmov 0.0|0.0   ;;  %v73_v9 = vld [vmem:[%s300_s3 + $0x10] sm:$0xff]  ;;  %vm228_vm0 = vmmov 0   ;;  %v229_v17 = vmov 0.0   ;;  %v28_v19 = vlaneseq }
   0x2   :  { %25 = vperm.xlu0 %216, %v20_v1   ;;  %51 = vperm.xlu1 %218, %v20_v1   ;;  %v71_v5 = vld [vmem:[%s300_s3] sm:$0xff]  ;;  %v74_v10 = vld [vmem:[%s300_s3 + $0x18] sm:$0xff]  ;;  %v76_v13 = vld [vmem:[%s300_s3 + $0x28] sm:$0xff]  ;;  %vm86_vm1 = vcmask 523264   ;;  %vm160_vm2 = vcmask 15360  }
   0x3   :  { %v198_v7 = vpack.c.bf16 %v72_v6, %v71_v5  ;;  %197 = vmatprep.subr.bf16.mxu0 %v227_v8  ;;  %v201_v11 = vpack.c.bf16 %v74_v10, %v73_v9  ;;  %v75_v12 = vld [vmem:[%s300_s3 + $0x20] sm:$0xff]  ;;  %v77_v15 = vld [vmem:[%s300_s3 + $0x30] sm:$0xff]  ;;  %v78_v16 = vld [vmem:[%s300_s3 + $0x38] sm:$0xff]  ;;  %194 = vmatprep.mubr.msk.f32.mxu0 %vm228_vm0, %v229_v17  ;;  %v29_v20 = vshrl.u32 %v28_v19, 7 }
   0x4   :  { %v204_v14 = vpack.c.bf16 %v76_v13, %v75_v12  ;;  %v207_v18 = vpack.c.bf16 %v78_v16, %v77_v15  ;;  %v21_v22 = vld [vmem:[%s301_s1] sm:$0xf] }
   0x5   :  { %199 = vmatpush3.bf16.msra.mxu0 %v198_v7  ;;  %v30_v21 = vsub.s32 0, %v29_v20  ;;  %v46_v24 = vsub.s32 1, %v29_v20  ;;  %v56_v26 = vsub.s32 2, %v29_v20  ;;  %v66_v28 = vsub.s32 3, %v29_v20  ;;  %v166_v31 = vld [vmem:[%s302_s2] ss:$0 sm:$0xff] }
   0x6   :  { %217 = vset.pattern.permute.xlu0 %v225_v3  ;;  %219 = vset.pattern.permute.xlu1 %v226_v4  ;;  %v167_v44 = vld [vmem:[%s303_s4] ss:$0 sm:$0xff] }
   0x7   :  { %41 = vperm.xlu0 %217, %v20_v1   ;;  %61 = vperm.xlu1 %219, %v20_v1   ;;  %v31_v23 = vrot.slane %v21_v22, %v30_v21  ;;  %v47_v30 = vrot.slane %v21_v22, %v46_v24  ;;  %v57_v32 = vrot.slane %v21_v22, %v56_v26 }
   0x8   :  { %200 = vmatprep.subr.bf16.mxu0 %v227_v8  ;;  %v67_v33 = vrot.slane %v21_v22, %v66_v28 }
   0x9   :  { %202 = vmatpush3.bf16.msra.mxu0 %v201_v11 }
   0xa   :  { %203 = vmatprep.subr.bf16.mxu0 %v227_v8 }
   0xb   :  { %220 = vset.pattern.permute.xlu0 %v226_v4 }
   0xd   :  { %205 = vmatpush3.bf16.msra.mxu0 %v204_v14 }
   0xe   :  { %206 = vmatprep.subr.bf16.mxu0 %v227_v8 }
  0x11   :  { %208 = vmatpush3.bf16.msra.mxu0 %v207_v18 }
  0x81   :  { %v26_v25 = vpop.permute.xlu0 %25  ;;  %v52_v27 = vpop.permute.xlu1 %51 }
  0x82   :  { %v32_v29 = vmul.f32 %v31_v23, %v26_v25  ;;  %v58_v38 = vmul.f32 %v57_v32, %v52_v27 }
  0x84   :  { %v39_v36 = vadd.f32 %v166_v31, %v32_v29 }
  0x86   :  { %v42_v34 = vpop.permute.xlu0 %41  ;;  %v62_v35 = vpop.permute.xlu1 %61 }
  0x87   :  { %v48_v37 = vmul.f32 %v47_v30, %v42_v34  ;;  %v68_v40 = vmul.f32 %v67_v33, %v62_v35 }
  0x89   :  { %v49_v39 = vadd.f32 %v48_v37, %v39_v36 }
  0x8b   :  { %v59_v41 = vadd.f32 %v58_v38, %v49_v39 }
  0x8d   :  { %v69_v42 = vadd.f32 %v68_v40, %v59_v41 }
  0x8f   :  { %221 = vtanh.f32 %v69_v42 }
  0x99   :  { %v222_v43 = vpop.eup %221 }
  0x9a   :  { %195 = vmatmul.mubr.msk.f32.vlgmr.msra.gmra.mrb[0].mxu0 %vm86_vm1, %v222_v43 }
 0x16d   :  { %v156_v45 = vpop.f32.mrb[0].mxu0 }
 0x16e   :  { %v157_v46 = vadd.f32 %v167_v44, %v156_v45  ;;  %v196_v47 = vpop.f32.mrb[1].mxu0 }
 0x170   :  { %161 = vst.msk [vmem:[%s304_s5] sm:$0xff] %vm160_vm2, %v157_v46 }

</bundles_post_ra>
